<compile_context>
chip_gen: v5e
topology: v5e:2x2
jax: 0.10.0
libtpu: 0.0.40
codegen_flags: <defaults>
</compile_context>

<pallas_src>
import functools
import math

import jax
import jax.numpy as jnp
import numpy as np
from jax import lax
from jax.experimental import pallas as pl
from jax.experimental.pallas import tpu as pltpu


# ---------------------------------------------------------------------------
# helpers
# ---------------------------------------------------------------------------
def _eca_kernel_size(in_channels, b=1, gamma=2):
    k = int(abs((math.log(in_channels, 2) + b) / gamma))
    return k if k % 2 else k + 1


def _vmem_capacity_bytes():
    """Physical VMEM of the current TPU generation (fallback = smallest, v7x: 64 MiB)."""
    try:
        cap = int(pltpu.get_tpu_info().vmem_capacity_bytes)
        if cap > 0:
            return cap
    except Exception:
        pass
    return 64 * 1024 * 1024


def _vmem_params():
    cap = _vmem_capacity_bytes()
    budget = cap // 2                                   # live-bytes budget for block selection
    vmem_limit = min(cap * 3 // 4, 112 * 1024 * 1024)   # raised scoped-VMEM limit (review item)
    return budget, vmem_limit


def _pick_lane_tile(total, bytes_per_lane, budget):
    """Largest multiple-of-128 divisor of `total` whose live bytes fit `budget`.

    Keeps output tiles lane-dense (multiples of 128) -> unmasked vst (important on v5e,
    which has a single vector-store slot).  Falls back to the full extent (always a legal
    BlockSpec) if nothing fits.
    """
    best = None
    for t in range(128, total + 1, 128):
        if total % t == 0 and bytes_per_lane * t <= budget:
            best = t
    return best if best is not None else total


def _band_matrix(taps, c):
    """Banded (C, C) matrix s.t. pooled @ band == zero-padded 1-D conv with `taps`.

    Batch-invariant, so it is built once here (hoisted out of the kernel) instead of being
    rebuilt from iotas + selects on every grid step.
    """
    k = taps.shape[0]
    p = k // 2
    d = jnp.arange(c)[:, None] - jnp.arange(c)[None, :] + p     # tap index per (row, col)
    valid = (d >= 0) & (d < k)
    return jnp.where(valid, taps[jnp.clip(d, 0, k - 1)], 0.0).astype(jnp.float32)


# ---------------------------------------------------------------------------
# ChannAT (ECA) kernels
# ---------------------------------------------------------------------------
def _eca_fused_kernel(band_ref, x_ref, o_ref):
    """Fused single-slab path: one batch element per grid step.

    band_ref : VMEM (C, C)    hoisted banded conv matrix (batch invariant)
    x_ref    : VMEM (1, C, S) input slab, native dtype
    o_ref    : VMEM (1, C, S) output, aliased onto x's HBM buffer
    """
    x = x_ref[...]                                            # no full-slab f32 upcast
    pooled = jnp.mean(x, axis=-1, dtype=jnp.float32)          # (1, C), f32 accumulation
    y = jnp.dot(pooled, band_ref[...],
                preferred_element_type=jnp.float32)           # zero-padded k-tap channel conv
    gate = 1.0 + pl.reciprocal(1.0 + jnp.exp(-y), approx=False)   # 1 + sigmoid(y)
    # Multiply in the input dtype (only the tiny (1, C) gate is cast).
    # NOTE: for bf16 inputs on v5e (no bf16 VALU) keep this multiply in f32 instead.
    o_ref[...] = x * gate.astype(x.dtype)[..., None]


def _eca_pool_kernel(x_ref, sum_ref):
    """Two-pass path, pass 1: tiled pooled-sum reduction; grid = (B, S_tiles)."""
    @pl.when(pl.program_id(1) == 0)
    def _():
        sum_ref[...] = jnp.zeros_like(sum_ref)
    sum_ref[...] += jnp.sum(x_ref[...], axis=-1, keepdims=True, dtype=jnp.float32)


def _eca_apply_kernel(gate_ref, x_ref, o_ref):
    """Two-pass path, pass 2: out = x * (1 + sigmoid(y)) with the gate precomputed."""
    o_ref[...] = x_ref[...] * gate_ref[...]


def chann_at(x, conv_weight, *, force_two_pass=False, two_pass_s_tile=None):
    """ChannAT forward.  x: (B, C, T, H, W); conv_weight: (1, 1, k, k) from the Conv2d."""
    B, C, T, H, W = x.shape
    S = T * H * W
    k = conv_weight.shape[-1]
    p = k // 2
    taps = conv_weight[0, 0, :, p].astype(jnp.float32)        # effective 1-D taps (centre column)
    isz = jnp.dtype(x.dtype).itemsize

    budget, vmem_limit = _vmem_params()
    x3 = x.reshape(B, C, S)

    # Live VMEM of the fused path: double-buffered input + output slabs + the band.
    fused_live = 4 * C * S * isz + 2 * C * C * 4

    if not force_two_pass and fused_live <= budget:
        # ---------------- fused single-slab path (bandwidth optimal: 1R + 1W) ----------------
        band = _band_matrix(taps, C)
        out3 = pl.pallas_call(
            _eca_fused_kernel,
            out_shape=jax.ShapeDtypeStruct((B, C, S), x.dtype),
            grid_spec=pltpu.PrefetchScalarGridSpec(
                num_scalar_prefetch=0,
                grid=(B,),
                in_specs=[
                    pl.BlockSpec((C, C), lambda b: (0, 0)),          # hoisted band
                    pl.BlockSpec((1, C, S), lambda b: (b, 0, 0)),    # x slab
                ],
                out_specs=pl.BlockSpec((1, C, S), lambda b: (b, 0, 0)),
            ),
            input_output_aliases={1: 0},                             # write gate*x back over x
            compiler_params=pltpu.CompilerParams(
                dimension_semantics=("parallel",),
                vmem_limit_bytes=vmem_limit,
            ),
        )(band, x3)
        return out3.reshape(B, C, T, H, W)

    # ---------------- two-pass tiled path (slab does not fit VMEM, e.g. v7x) ----------------
    if (two_pass_s_tile is not None and S % two_pass_s_tile == 0
            and (two_pass_s_tile % 128 == 0 or two_pass_s_tile == S)):
        s_tile = two_pass_s_tile
    else:
        s_tile = _pick_lane_tile(S, 4 * C * isz, budget)
    n_s = S // s_tile

    # Pass 1: partial sums accumulated across S tiles, divided by the TRUE S afterwards.
    sums = pl.pallas_call(
        _eca_pool_kernel,
        out_shape=jax.ShapeDtypeStruct((B, C, 1), jnp.float32),
        grid_spec=pltpu.PrefetchScalarGridSpec(
            num_scalar_prefetch=0,
            grid=(B, n_s),
            in_specs=[pl.BlockSpec((1, C, s_tile), lambda b, s: (b, 0, s))],
            out_specs=pl.BlockSpec((1, C, 1), lambda b, s: (b, 0, 0)),
        ),
        compiler_params=pltpu.CompilerParams(
            dimension_semantics=("parallel", "arbitrary"),
            vmem_limit_bytes=vmem_limit,
        ),
    )(x3)

    # Tiny k-tap conv + sigmoid on (B, C) in plain JAX (negligible work).
    pooled = sums[:, :, 0] / float(S)
    ypad = jnp.pad(pooled, ((0, 0), (p, p)))
    y = jnp.zeros_like(pooled)
    for d in range(k):
        y = y + taps[d] * ypad[:, d:d + C]
    gate = (1.0 + jax.nn.sigmoid(y)).astype(x.dtype).reshape(B, C, 1)

    # Pass 2: lane-dense elementwise apply; both grid axes parallel (v7x dual TensorCore).
    out3 = pl.pallas_call(
        _eca_apply_kernel,
        out_shape=jax.ShapeDtypeStruct((B, C, S), x.dtype),
        grid_spec=pltpu.PrefetchScalarGridSpec(
            num_scalar_prefetch=0,
            grid=(B, n_s),
            in_specs=[
                pl.BlockSpec((1, C, 1), lambda b, s: (b, 0, 0)),       # per-batch gate
                pl.BlockSpec((1, C, s_tile), lambda b, s: (b, 0, s)),  # lane-dense x tile
            ],
            out_specs=pl.BlockSpec((1, C, s_tile), lambda b, s: (b, 0, s)),
        ),
        input_output_aliases={1: 0},
        compiler_params=pltpu.CompilerParams(
            dimension_semantics=("parallel", "parallel"),
            vmem_limit_bytes=vmem_limit,
        ),
    )(gate, x3)
    return out3.reshape(B, C, T, H, W)


# ---------------------------------------------------------------------------
# Conv3d (im2col + Pallas MXU matmul)
# ---------------------------------------------------------------------------
def _conv_mm_kernel(w_ref, p_ref, o_ref):
    """w_ref: (Cout, K); p_ref: (1, K, s_tile); o_ref: (1, Cout, s_tile)."""
    o_ref[0] = jnp.dot(w_ref[...], p_ref[0],
                       preferred_element_type=jnp.float32).astype(o_ref.dtype)


def _im2col_3d(x, ksize, stride, padding):
    """Patches with feature ordering (Cin, kt, kh, kw) -> matches weight.reshape(Cout, -1)."""
    B, Cin, T, H, W = x.shape
    kt, kh, kw = ksize
    st, sh, sw = stride
    pt, ph, pw = padding
    To = (T + 2 * pt - kt) // st + 1
    Ho = (H + 2 * ph - kh) // sh + 1
    Wo = (W + 2 * pw - kw) // sw + 1
    xp = jnp.pad(x, ((0, 0), (0, 0), (pt, pt), (ph, ph), (pw, pw)))
    cols = []
    for dt in range(kt):
        for dh in range(kh):
            for dw in range(kw):
                v = lax.slice(
                    xp,
                    (0, 0, dt, dh, dw),
                    (B, Cin, dt + (To - 1) * st + 1, dh + (Ho - 1) * sh + 1,
                     dw + (Wo - 1) * sw + 1),
                    (1, 1, st, sh, sw))
                cols.append(v)                                  # (B, Cin, To, Ho, Wo)
    patches = jnp.stack(cols, axis=2)                           # (B, Cin, kt*kh*kw, To, Ho, Wo)
    return patches.reshape(B, Cin * kt * kh * kw, To * Ho * Wo), (To, Ho, Wo)


def conv3d_pallas(x, w, *, stride=1, tstride=1):
    """Conv3d(bias=False, pad='same'-style) = im2col (XLA) + Pallas matmul (MXU)."""
    # TODO(synk): patch extraction (im2col) runs as plain XLA ops; a production kernel
    # would stream the patches inside the Pallas pipeline instead of materialising them.
    B, Cin, T, H, W = x.shape
    Cout, _, kt, kh, kw = w.shape
    st, sh, sw = tstride, stride, stride
    pt, ph, pw = (kt - 1) // 2, (kh - 1) // 2, (kw - 1) // 2

    patches, (To, Ho, Wo) = _im2col_3d(x, (kt, kh, kw), (st, sh, sw), (pt, ph, pw))
    K = Cin * kt * kh * kw
    So = To * Ho * Wo
    wmat = w.reshape(Cout, K).astype(x.dtype)

    isz = jnp.dtype(x.dtype).itemsize
    budget, vmem_limit = _vmem_params()
    fixed = 2 * Cout * K * isz
    s_tile = _pick_lane_tile(So, 2 * (K + Cout) * isz, max(budget - fixed, 1))
    n_s = So // s_tile

    out = pl.pallas_call(
        _conv_mm_kernel,
        out_shape=jax.ShapeDtypeStruct((B, Cout, So), x.dtype),
        grid_spec=pltpu.PrefetchScalarGridSpec(
            num_scalar_prefetch=0,
            grid=(B, n_s),
            in_specs=[
                pl.BlockSpec((Cout, K), lambda b, s: (0, 0)),          # weights (reused)
                pl.BlockSpec((1, K, s_tile), lambda b, s: (b, 0, s)),  # im2col patches
            ],
            out_specs=pl.BlockSpec((1, Cout, s_tile), lambda b, s: (b, 0, s)),
        ),
        compiler_params=pltpu.CompilerParams(
            dimension_semantics=("parallel", "parallel"),
            vmem_limit_bytes=vmem_limit,
        ),
    )(wmat, patches)
    return out.reshape(B, Cout, To, Ho, Wo)


# ---------------------------------------------------------------------------
# TSAttBlock forward
# ---------------------------------------------------------------------------
def tsatt_block(xrgb, xflow, eca_weight, conv_weight, *, stride=1, tstride=1):
    x = jnp.concatenate([xrgb, xflow], axis=1)
    x = chann_at(x, eca_weight)
    x = conv3d_pallas(x, conv_weight, stride=stride, tstride=tstride)
    # TODO(synk): non_local (pvl.create_nonlocal) and uptemporal (ConvTranspose3d) branches
    # are not implemented; the module constructs them only when the flags are True
    # (defaults are False, matching this forward).
    return x


# ---------------------------------------------------------------------------
# pure-JAX references
# ---------------------------------------------------------------------------
def chann_at_ref(x, conv_weight):
    B, C, T, H, W = x.shape
    k = conv_weight.shape[-1]
    p = k // 2
    pooled = jnp.mean(x, axis=(2, 3, 4))
    ypad = jnp.pad(pooled, ((0, 0), (p, p)))
    taps = conv_weight[0, 0, :, p]
    y = jnp.zeros((B, C), x.dtype)
    for d in range(k):
        y = y + taps[d] * ypad[:, d:d + C]
    gate = jax.nn.sigmoid(y)
    return x * gate[:, :, None, None, None] + x


def tsatt_block_ref(xrgb, xflow, eca_weight, conv_weight, *, stride=1, tstride=1):
    x = jnp.concatenate([xrgb, xflow], axis=1)
    x = chann_at_ref(x, eca_weight)
    kt, kh, kw = conv_weight.shape[2:]
    pads = [((kt - 1) // 2,) * 2, ((kh - 1) // 2,) * 2, ((kw - 1) // 2,) * 2]
    dn = lax.conv_dimension_numbers(x.shape, conv_weight.shape, ('NCDHW', 'OIDHW', 'NCDHW'))
    return lax.conv_general_dilated(
        x, conv_weight, window_strides=(tstride, stride, stride), padding=pads,
        dimension_numbers=dn, precision=lax.Precision.HIGHEST)


# ---------------------------------------------------------------------------
# main
# ---------------------------------------------------------------------------
if __name__ == "__main__":
    key = jax.random.PRNGKey(0)
    B = 2
    rgb_c, flow_c = 8, 8
    C = rgb_c + flow_c                     # 16 -> ECA kernel size 3
    T, H, W = 4, 8, 8                      # S = 256 (multiple of 128: exercises the tiled path)
    out_channels = 16
    ksize, tksize = 3, 1

    k_eca = _eca_kernel_size(C)
    krgb, kflow, kwe, kwc = jax.random.split(key, 4)
    xrgb = jax.random.normal(krgb, (B, rgb_c, T, H, W), dtype=jnp.float32)
    xflow = jax.random.normal(kflow, (B, flow_c, T, H, W), dtype=jnp.float32)
    # The module's init_zero=True would make the ECA gate a constant 1.5; random weights
    # exercise the conv path while keeping the exact same forward semantics.
    eca_w = 0.1 * jax.random.normal(kwe, (1, 1, k_eca, k_eca), dtype=jnp.float32)
    conv_w = 0.05 * jax.random.normal(kwc, (out_channels, C, tksize, ksize, ksize),
                                      dtype=jnp.float32)

    x_cat = jnp.concatenate([xrgb, xflow], axis=1)
    eca_ref_out = chann_at_ref(x_cat, eca_w)

    # --- ChannAT: fused single-slab path ---
    eca_out = jax.block_until_ready(jax.jit(chann_at)(x_cat, eca_w))
    np.testing.assert_allclose(np.asarray(eca_out), np.asarray(eca_ref_out),
                               rtol=1e-5, atol=1e-5)

    # --- ChannAT: forced two-pass tiled path (the large-shape / v7x code path) ---
    eca_two_pass = jax.jit(functools.partial(chann_at, force_two_pass=True,
                                             two_pass_s_tile=128))
    eca_out2 = jax.block_until_ready(eca_two_pass(x_cat, eca_w))
    np.testing.assert_allclose(np.asarray(eca_out2), np.asarray(eca_ref_out),
                               rtol=1e-5, atol=1e-5)

    # --- Full TSAttBlock forward: concat -> ChannAT -> Conv3d ---
    out = jax.block_until_ready(jax.jit(tsatt_block)(xrgb, xflow, eca_w, conv_w))
    ref = tsatt_block_ref(xrgb, xflow, eca_w, conv_w)
    np.testing.assert_allclose(np.asarray(out), np.asarray(ref), rtol=5e-4, atol=5e-4)

    print("KERNEL_OK")
</pallas_src>

<mosaic_0001>
module attributes {stable_mosaic.version = 11 : i64} {
  func.func @_eca_fused_kernel(%arg0: i32, %arg1: memref<16x16xf32, #tpu.memory_space<vmem>>, %arg2: memref<1x16x256xf32, #tpu.memory_space<vmem>>, %arg3: memref<1x16x256xf32, #tpu.memory_space<vmem>>) attributes {dimension_semantics = [#tpu.dimension_semantics<parallel>], iteration_bounds = array<i64: 2>, scalar_prefetch = 0 : i64, scratch_operands = 0 : i64, tpu.core_type = #tpu.core_type<tc>, window_params = [{pipeline_mode = #tpu.pipeline_mode<synchronous>, transform_indices = @transform_0, window_bounds = array<i64: 16, 16>}, {transform_indices = @transform_1, window_bounds = array<i64: 1, 16, 256>}, {transform_indices = @transform_2, window_bounds = array<i64: 1, 16, 256>}]} {
    %c0 = arith.constant 0 : index
    %c0_0 = arith.constant 0 : index
    %c0_1 = arith.constant 0 : index
    %0 = vector.load %arg2[%c0, %c0_0, %c0_1] : memref<1x16x256xf32, #tpu.memory_space<vmem>>, vector<1x16x256xf32>
    %cst = arith.constant dense<0.000000e+00> : vector<1x16xf32>
    %1 = vector.multi_reduction <add>, %0, %cst [2] : vector<1x16x256xf32> to vector<1x16xf32>
    %cst_2 = arith.constant 2.560000e+02 : f32
    %2 = vector.broadcast %cst_2 : f32 to vector<1x16xf32>
    %3 = arith.divf %1, %2 : vector<1x16xf32>
    %c0_3 = arith.constant 0 : index
    %c0_4 = arith.constant 0 : index
    %4 = vector.load %arg1[%c0_3, %c0_4] : memref<16x16xf32, #tpu.memory_space<vmem>>, vector<16x16xf32>
    %cst_5 = arith.constant dense<0.000000e+00> : vector<1x16xf32>
    %5 = tpu.matmul %3, %4, %cst_5 {dimension_numbers = #tpu.dot_dimension_numbers<[1], [0], [0], [1], [0, 0, 1, 1], [], []>} : vector<1x16xf32>, vector<16x16xf32>, vector<1x16xf32> -> vector<1x16xf32>
    %cst_6 = arith.constant 0.000000e+00 : f32
    %6 = vector.broadcast %cst_6 : f32 to vector<1x16xf32>
    %7 = arith.subf %6, %5 : vector<1x16xf32>
    %8 = math.exp %7 : vector<1x16xf32>
    %cst_7 = arith.constant 1.000000e+00 : f32
    %9 = vector.broadcast %cst_7 : f32 to vector<1x16xf32>
    %10 = arith.addf %9, %8 : vector<1x16xf32>
    %11 = tpu.reciprocal %10 : vector<1x16xf32> -> vector<1x16xf32>
    %cst_8 = arith.constant 1.000000e+00 : f32
    %12 = vector.broadcast %cst_8 : f32 to vector<1x16xf32>
    %13 = arith.addf %12, %11 : vector<1x16xf32>
    %14 = vector.shape_cast %13 : vector<1x16xf32> to vector<1x16x1xf32>
    %15 = vector.broadcast %14 : vector<1x16x1xf32> to vector<1x16x256xf32>
    %16 = arith.mulf %0, %15 : vector<1x16x256xf32>
    %c0_9 = arith.constant 0 : index
    %c0_10 = arith.constant 0 : index
    %c0_11 = arith.constant 0 : index
    %17 = vector.load %arg3[%c0_9, %c0_10, %c0_11] : memref<1x16x256xf32, #tpu.memory_space<vmem>>, vector<1x16x256xf32>
    tpu.vector_store %arg3[%c0_9, %c0_10, %c0_11], %16 {strides = array<i32>} : memref<1x16x256xf32, #tpu.memory_space<vmem>>, vector<1x16x256xf32>,
    return
  }
  func.func @transform_0(%arg0: i32) -> (i32, i32) {
    %c0_i32 = arith.constant 0 : i32
    %c0_i32_0 = arith.constant 0 : i32
    %c0_i32_1 = arith.constant 0 : i32
    return %c0_i32, %c0_i32_0 : i32, i32
  }
  func.func @transform_1(%arg0: i32) -> (i32, i32, i32) {
    %c0_i32 = arith.constant 0 : i32
    %c0_i32_0 = arith.constant 0 : i32
    %c0_i32_1 = arith.constant 0 : i32
    return %arg0, %c0_i32, %c0_i32_0 : i32, i32, i32
  }
  func.func @transform_2(%arg0: i32) -> (i32, i32, i32) {
    %c0_i32 = arith.constant 0 : i32
    %c0_i32_0 = arith.constant 0 : i32
    %c0_i32_1 = arith.constant 0 : i32
    return %arg0, %c0_i32, %c0_i32_0 : i32, i32, i32
  }
}

</mosaic_0001>

<bundles_post_ra>
// kernel: chann_at.1
= control target key start
LH: loop header
LB: loop body
LE: loop exit
PB: predicated region body
PF: predicated region fallthrough
CT: control target
= control target key end

     0   :  { %s348_s9 = smov 0   ;;  %s394_s0 = inlined_call_operand.vmem [shape: f32[16,16], index: 0, kind: input, shape index: {}]   ;;  %s395_s1 = inlined_call_operand.vmem [shape: f32[2,16,256], index: 1, kind: input, shape index: {}, may-alias: {1,2}]   ;;  %s396_s2 = inlined_call_operand.vmem [shape: f32[2,16,256], index: 2, kind: output, shape index: {}, may-alias: {1,2}]  }
   0x1 LB: > { %s292_s10 = sadd.s32 4294967295, %s330_s9   ;;  %p296_p0 = scmp.ge.s32.totalorder %s330_s9, 1  ;;  %s330_s9 = sphi %s348_s9, %s12_s9  }
   0x2   : > { %p112_p1 = scmp.lt.s32.totalorder %s330_s9, 3 }
   0x4   : > { %p113_p2 = pnand %p296_p0, %p112_p1 }
   0x5   : > { %p134_p3 = scmp.lt.s32.totalorder (!%p113_p2), %s292_s10, 1 }
   0x6   : > { %116 = sbr.rel (%p113_p2) target bundleno = 441 (0x1b9), region = 28 }
   0xb   : > { %s398_s10 = smov (!%p134_p3, %s292_s10), 1  ;;  %v164_v6 = vld [vmem:[%s394_s0 + $0x8] sm:$0xff]  ;;  %v332_v7 = vmov 256.0   ;;  %v163_v8 = vld [vmem:[%s394_s0] sm:$0xff]  ;;  %v167_v15 = vlaneseq  ;;  %vm172_vm1 = vcmask 130112   ;;  %vm174_vm2 = vcmask 130048  }
   0xc   : > { %s304_s11 = sshll.u32 %s398_s10, 5  ;;  %318 = vrcp.f32 %v332_v7  ;;  %191 = vmatpush.msra.mxu0 %v164_v6 }
   0xd   : > { %s138_s14 = scalar_lea.vmem %s395_s1, %s304_s11  ;;  %v168_v17 = vand.u32 127, %v167_v15  ;;  %v218_v25 = vshrl.u32 %v167_v15, 7  ;;  %s143_s21 = scalar_lea.vmem %s396_s2, %s304_s11 }
   0xe   : > { %v364_v0 = vld [vmem:[%s138_s14] sm:$0xff]  ;;  %v366_v1 = vld [vmem:[%s138_s14 + $0x8] sm:$0xff]  ;;  %v370_v3 = vld [vmem:[%s138_s14 + $0x10] sm:$0xff]  ;;  %192 = vmatpush.msra.mxu0 %v163_v8 }
   0xf   : > { %v148_v2 = vadd.f32 %v366_v1, %v364_v0  ;;  %v372_v4 = vld [vmem:[%s138_s14 + $0x18] sm:$0xff]  ;;  %v170_v19 = vadd.s32 4294967288, %v168_v17  ;;  %315 = vset.pattern.permute.xlu1 %v218_v25  ;;  %v225_v26 = vadd.s32 8, %v218_v25 }
  0x10   : > { %v151_v5 = vadd.f32 %v372_v4, %v370_v3 }
  0x11   : > { %149 = vadd.xlane.f32.xlu0 %v148_v2 }
  0x12   : > { %v319_v9 = vpop.eup %318  ;;  %317 = vset.pattern.permute.xlu0 %v225_v26 }
  0x13   : > { %v155_v10 = vmul.f32 256.0, %v319_v9  ;;  %vm159_vm0 = vweird.f32 %v319_v9 }
  0x15   : > { %v156_v11 = vsub.f32 1.0, %v155_v10 }
  0x17   : > { %v157_v12 = vmul.f32 %v319_v9, %v156_v11 }
  0x19   : > { %152 = vadd.xlane.f32.xlu0 %v151_v5  ;;  %v158_v13 = vadd.f32 %v319_v9, %v157_v12 }
  0x1b   : > { %v160_v16 = vsel %vm159_vm0, %v319_v9, %v158_v13 }
  0x84   : > { %v150_v14 = vpop.xlane.xlu0 %149 }
  0x85   : > { %v161_v18 = vmul.f32 %v160_v16, %v150_v14 }
  0x87   : > { %v169_v22 = vperm.slane %v161_v18, %v168_v17 }
  0x8c   : > { %v153_v20 = vpop.xlane.xlu0 %152 }
  0x8d   : > { %v162_v21 = vmul.f32 %v160_v16, %v153_v20 }
  0x8f   : > { %v171_v23 = vperm.slane %v162_v21, %v170_v19 }
  0x91   : > { %v173_v24 = vsel %vm172_vm1, %v171_v23, %v169_v22 }
  0x92   : > { %301 = vmatmul.msk.f32.vlgmr.msra.gmra.mxu0 %vm174_vm2, %v173_v24 }
 0x10f   : > { %v194_v27 = vpop.f32.mrf.mxu0 }
 0x110   : > { %v197_v28 = vsub.f32 0.0, %v194_v27 }
 0x112   : > { %v198_v29 = vmul.f32 1.442695, %v197_v28 }
 0x114   : > { %320 = vpow2.f32 %v198_v29 }
 0x11a   : > { %v321_v30 = vpop.eup %320 }
 0x11b   : > { %v200_v31 = vadd.f32 1.0, %v321_v30 }
 0x11d   : > { %322 = vrcp.f32 %v200_v31  ;;  %v212_v35 = vand.u32 2147483648, %v200_v31  ;;  %v210_v37 = vand.u32 2147483647, %v200_v31  ;;  %vm206_vm4 = vweird.f32 %v200_v31 }
 0x11f   : > { %v213_v39 = vor.u32 1.1754944e-38, %v212_v35  ;;  %vm211_vm6 = vcmp.eq.f32.partialorder %v210_v37, 8.507059e+37 }
 0x123   : > { %v323_v32 = vpop.eup %322 }
 0x124   : > { %v202_v33 = vmul.f32 %v323_v32, %v200_v31  ;;  %vm207_vm3 = vweird.f32 %v323_v32 }
 0x125   : > { %vm208_vm5 = vmor %vm206_vm4, %vm207_vm3 }
 0x126   : > { %v203_v34 = vsub.f32 1.0, %v202_v33 }
 0x128   : > { %v204_v36 = vmul.f32 %v323_v32, %v203_v34 }
 0x12a   : > { %v205_v38 = vadd.f32 %v323_v32, %v204_v36 }
 0x12c   : > { %v209_v40 = vsel %vm208_vm5, %v323_v32, %v205_v38 }
 0x12d   : > { %v214_v41 = vsel %vm211_vm6, %v213_v39, %v209_v40 }
 0x12e   : > { %v215_v42 = vadd.f32 1.0, %v214_v41 }
 0x130   : > { %v216_v43 = vperm.slane %v215_v42, 0 }
 0x132   : > { %221 = vperm.xlu1 %315, %v216_v43  }
 0x13a   : > { %316 = vset.pattern.permute.xlu1 %v225_v26 }
 0x142   : > { %227 = vperm.xlu1 %316, %v216_v43  }
 0x1a4   : > { %v222_v44 = vpop.permute.xlu1 %221 }
 0x1a5   : > { %v229_v45 = vmul.f32 %v222_v44, %v364_v0  ;;  %v230_v46 = vmul.f32 %v222_v44, %v366_v1 }
 0x1a7   : > { %233 = vst [vmem:[%s143_s21] sm:$0xff] %v229_v45 }
 0x1a8   : > { %234 = vst [vmem:[%s143_s21 + $0x8] sm:$0xff] %v230_v46 }
 0x1b4   : > { %v228_v47 = vpop.permute.xlu1 %227 }
 0x1b5   : > { %v231_v48 = vmul.f32 %v228_v47, %v370_v3  ;;  %v232_v49 = vmul.f32 %v228_v47, %v372_v4 }
 0x1b7   : > { %235 = vst [vmem:[%s143_s21 + $0x10] sm:$0xff] %v231_v48 }
 0x1b8   : > { %236 = vst [vmem:[%s143_s21 + $0x18] sm:$0xff] %v232_v49 }
 0x1b9 PF: > { %s12_s9 = sadd.s32 1, %s330_s9  }
 0x1ba   : > { %p9_p4 = scmp.ge.s32.totalorder %s12_s9, 4  }
 0x1bc   :  { %11 = sbr.rel (!%p9_p4) target bundleno = 1 (0x1), region = 58 }

</bundles_post_ra>
